<compile_context>
chip_gen: v7x
topology: tpu7x:2x2x1
jax: 0.10.0
libtpu: 0.0.40
codegen_flags: <defaults>
</compile_context>

<pallas_src>
import jax
import jax.numpy as jnp
from jax import lax
from jax.experimental import pallas as pl
from jax.experimental.pallas import tpu as pltpu

K = 5        # conv kernel size
STRIDE = 2
PAD = 2      # 'padding=2' in the PyTorch module


def _round_up(x, m):
    return ((x + m - 1) // m) * m


# ---------------------------------------------------------------------------
# Kernel: fused 5x5 / stride-2 conv for the whole (lane-packed) batch.
#   xpar_ref : (2, Hph_pad, Lin)  bf16  row-parity planes of the zero-padded
#                                       input; batch packed along lanes:
#                                       lane = n*Dp + (wcol*Cin + ci)
#   w_ref    : (K, Lin, Lout)     bf16  banded (dx taps + stride-2 columns)
#                                       and batch-block-diagonal weights
#   b_ref    : (1, Lout)          f32   bias tiled over output lanes
#   out_ref  : (Hout, Lout)       f32   lane = n*Wout*Cout + j*Cout + co
# ---------------------------------------------------------------------------
def strided_conv_kernel(xpar_ref, w_ref, b_ref, out_ref):
    Hout = out_ref.shape[0]
    acc = jnp.zeros(out_ref.shape, jnp.float32)
    # 5 row taps; each is one contiguous (Hout, Lin) bf16 load + one MXU
    # matmul with f32 accumulation.
    for dy in range(K):
        r = dy % 2          # row-parity plane
        o = dy // 2         # static row offset inside the parity plane
        lhs = xpar_ref[r, pl.ds(o, Hout), :]               # (Hout, Lin) bf16
        acc = acc + jnp.dot(lhs, w_ref[dy],
                            preferred_element_type=jnp.float32)
    out_ref[...] = acc + b_ref[...]


# ---------------------------------------------------------------------------
# Init-time parameter preparation (hoisted out of the forward hot path).
# ---------------------------------------------------------------------------
def prepare_pool_params(weight_oihw, bias, N, H, W):
    Cout, Cin = weight_oihw.shape[0], weight_oihw.shape[1]
    Wp = W + 2 * PAD
    Wout = (W + 2 * PAD - K) // STRIDE + 1
    D = Wp * Cin
    Dp = _round_up(D, 128)          # pad contraction dim to full lanes
    Mout = Wout * Cout

    # Banded per-row-tap weights:
    #   Wtaps[dy, wcol*Cin + ci, j*Cout + co] = weight[co, ci, dy, wcol - 2*j]
    #   (0 if wcol - 2*j not in [0, K))
    wt = jnp.transpose(weight_oihw, (2, 3, 1, 0)).astype(jnp.float32)  # (K,K,Cin,Cout)
    wcol = jnp.arange(Wp)
    jj = jnp.arange(Wout)
    dx = wcol[:, None] - STRIDE * jj[None, :]                          # (Wp, Wout)
    valid = ((dx >= 0) & (dx < K)).astype(jnp.float32)
    dx_c = jnp.clip(dx, 0, K - 1)
    Wfull = wt[:, dx_c, :, :] * valid[None, :, :, None, None]          # (K,Wp,Wout,Cin,Cout)
    Wtaps = jnp.transpose(Wfull, (0, 1, 3, 2, 4)).reshape(K, D, Mout)
    Wtaps = jnp.pad(Wtaps, ((0, 0), (0, Dp - D), (0, 0)))              # (K, Dp, Mout)

    # Batch block-diagonal: batch n reads lanes [n*Dp, (n+1)*Dp) of the LHS
    # and writes lanes [n*Mout, (n+1)*Mout) of the output.
    eye_n = jnp.eye(N, dtype=jnp.float32)
    Wbig = jnp.einsum('kdm,ab->kadbm', Wtaps, eye_n)
    Wbig = Wbig.reshape(K, N * Dp, N * Mout).astype(jnp.bfloat16)

    b_row = jnp.tile(bias.astype(jnp.float32), N * Wout).reshape(1, N * Mout)
    return Wbig, b_row


# ---------------------------------------------------------------------------
# Forward wrapper: NCHW in -> NCHW out (PyTorch convention)
# ---------------------------------------------------------------------------
def pool_forward(x_nchw, Wbig, b_row):
    N, Cin, H, W = x_nchw.shape
    Hout = (H + 2 * PAD - K) // STRIDE + 1
    Wout = (W + 2 * PAD - K) // STRIDE + 1
    Hp, Wp = H + 2 * PAD, W + 2 * PAD
    D = Wp * Cin
    Dp = Wbig.shape[1] // N
    Lout = Wbig.shape[2]
    Cout = Lout // (N * Wout)

    Hph = -(-Hp // 2)                                       # ceil(Hp / 2)
    Hph_pad = _round_up(max(Hph, Hout + (K - 1) // 2), 8)   # sublane-aligned

    # ---- input prep: NHWC, zero pad, flatten rows, pad lanes, parity split,
    #      batch packed along lanes ----------------------------------------
    x_nhwc = jnp.transpose(x_nchw, (0, 2, 3, 1))                    # (N,H,W,Cin)
    xpad = jnp.pad(x_nhwc, ((0, 0), (PAD, PAD), (PAD, PAD), (0, 0)))
    xrows = xpad.reshape(N, Hp, D)
    xrows = jnp.pad(xrows, ((0, 0), (0, 2 * Hph_pad - Hp), (0, Dp - D)))
    # xpar[r, t, n*Dp + j] = padded_row[2*t + r] of batch n, element j
    xpar = (xrows.reshape(N, Hph_pad, 2, Dp)
                 .transpose(2, 1, 0, 3)
                 .reshape(2, Hph_pad, N * Dp)
                 .astype(jnp.bfloat16))

    # ---- single fused strided-conv kernel call ----------------------------
    out_flat = pl.pallas_call(
        strided_conv_kernel,
        grid=(1,),
        in_specs=[
            pl.BlockSpec((2, Hph_pad, N * Dp), lambda i: (0, 0, 0)),
            pl.BlockSpec((K, N * Dp, Lout), lambda i: (0, 0, 0)),
            pl.BlockSpec((1, Lout), lambda i: (0, 0)),
        ],
        out_specs=pl.BlockSpec((Hout, Lout), lambda i: (0, 0)),
        out_shape=jax.ShapeDtypeStruct((Hout, Lout), jnp.float32),
        compiler_params=pltpu.CompilerParams(
            dimension_semantics=("arbitrary",)),
    )(xpar, Wbig, b_row)

    # (Hout, N*Wout*Cout) -> (N, Cout, Hout, Wout)
    out = out_flat.reshape(Hout, N, Wout, Cout).transpose(1, 3, 0, 2)
    return out


pool_forward_jit = jax.jit(pool_forward)


if __name__ == "__main__":
    # small shapes consistent with the module: batch=2, in_ch=4, out_ch=8, 16x16
    N, Cin, Cout, H, W = 2, 4, 8, 16, 16

    key = jax.random.PRNGKey(0)
    kx, kw, kb = jax.random.split(key, 3)
    x = jax.random.normal(kx, (N, Cin, H, W), dtype=jnp.float32)

    # deterministic parameter init (Conv2d weight/bias shapes & default bound)
    fan_in = Cin * K * K
    bound = float(1.0 / (fan_in ** 0.5))
    weight = jax.random.uniform(kw, (Cout, Cin, K, K), jnp.float32, -bound, bound)
    bias = jax.random.uniform(kb, (Cout,), jnp.float32, -bound, bound)

    # Parameters are banded / block-diagonalized ONCE, outside the hot path.
    Wbig, b_row = prepare_pool_params(weight, bias, N, H, W)
    Wbig = jax.block_until_ready(Wbig)

    out = pool_forward_jit(x, Wbig, b_row)
    out = jax.block_until_ready(out)

    Hout = (H + 2 * PAD - K) // STRIDE + 1
    Wout = (W + 2 * PAD - K) // STRIDE + 1
    assert out.shape == (N, Cout, Hout, Wout), out.shape

    # Tight check vs a reference with identical numerics (bf16 operands,
    # f32 accumulation — what the kernel feeds the MXU).
    ref_bf16 = lax.conv_general_dilated(
        x.astype(jnp.bfloat16), weight.astype(jnp.bfloat16),
        window_strides=(STRIDE, STRIDE), padding=((PAD, PAD), (PAD, PAD)),
        dimension_numbers=("NCHW", "OIHW", "NCHW"),
        preferred_element_type=jnp.float32) + bias[None, :, None, None]
    err_bf16 = float(jnp.max(jnp.abs(out - ref_bf16)))
    assert jnp.allclose(out, ref_bf16, rtol=1e-3, atol=1e-3), err_bf16

    # Looser check vs the full-f32 module semantics (bf16 operand rounding).
    ref_f32 = lax.conv_general_dilated(
        x, weight, window_strides=(STRIDE, STRIDE),
        padding=((PAD, PAD), (PAD, PAD)),
        dimension_numbers=("NCHW", "OIHW", "NCHW")) + bias[None, :, None, None]
    err_f32 = float(jnp.max(jnp.abs(out - ref_f32)))
    assert jnp.allclose(out, ref_f32, rtol=5e-2, atol=5e-2), err_f32

    print("KERNEL_OK")
</pallas_src>

<mosaic_0001>
module attributes {stable_mosaic.version = 11 : i64} {
  func.func @strided_conv_kernel(%arg0: i32, %arg1: memref<2x16x256xbf16, #tpu.memory_space<vmem>>, %arg2: memref<5x256x128xbf16, #tpu.memory_space<vmem>>, %arg3: memref<1x128xf32, #tpu.memory_space<vmem>>, %arg4: memref<8x128xf32, #tpu.memory_space<vmem>>) attributes {dimension_semantics = [#tpu.dimension_semantics<arbitrary>], iteration_bounds = array<i64: 1>, scalar_prefetch = 0 : i64, scratch_operands = 0 : i64, tpu.core_type = #tpu.core_type<tc>, window_params = [{pipeline_mode = #tpu.pipeline_mode<synchronous>, transform_indices = @transform_0, window_bounds = array<i64: 2, 16, 256>}, {pipeline_mode = #tpu.pipeline_mode<synchronous>, transform_indices = @transform_1, window_bounds = array<i64: 5, 256, 128>}, {pipeline_mode = #tpu.pipeline_mode<synchronous>, transform_indices = @transform_2, window_bounds = array<i64: 1, 128>}, {pipeline_mode = #tpu.pipeline_mode<synchronous>, transform_indices = @transform_3, window_bounds = array<i64: 8, 128>}]} {
    %cst = arith.constant 0.000000e+00 : f32
    %0 = vector.broadcast %cst : f32 to vector<8x128xf32>
    %c0 = arith.constant 0 : index
    %c0_0 = arith.constant 0 : index
    %c0_1 = arith.constant 0 : index
    %1 = vector.load %arg1[%c0, %c0_0, %c0_1] : memref<2x16x256xbf16, #tpu.memory_space<vmem>>, vector<1x8x256xbf16>
    %2 = vector.shape_cast %1 : vector<1x8x256xbf16> to vector<8x256xbf16>
    %c0_2 = arith.constant 0 : index
    %c0_3 = arith.constant 0 : index
    %c0_4 = arith.constant 0 : index
    %3 = vector.load %arg2[%c0_2, %c0_3, %c0_4] : memref<5x256x128xbf16, #tpu.memory_space<vmem>>, vector<1x256x128xbf16>
    %4 = vector.shape_cast %3 : vector<1x256x128xbf16> to vector<256x128xbf16>
    %cst_5 = arith.constant dense<0.000000e+00> : vector<8x128xf32>
    %5 = tpu.matmul %2, %4, %cst_5 {dimension_numbers = #tpu.dot_dimension_numbers<[1], [0], [0], [1], [0, 0, 1, 1], [], []>} : vector<8x256xbf16>, vector<256x128xbf16>, vector<8x128xf32> -> vector<8x128xf32>
    %6 = arith.addf %0, %5 : vector<8x128xf32>
    %c1 = arith.constant 1 : index
    %c0_6 = arith.constant 0 : index
    %c0_7 = arith.constant 0 : index
    %7 = vector.load %arg1[%c1, %c0_6, %c0_7] : memref<2x16x256xbf16, #tpu.memory_space<vmem>>, vector<1x8x256xbf16>
    %8 = vector.shape_cast %7 : vector<1x8x256xbf16> to vector<8x256xbf16>
    %c1_8 = arith.constant 1 : index
    %c0_9 = arith.constant 0 : index
    %c0_10 = arith.constant 0 : index
    %9 = vector.load %arg2[%c1_8, %c0_9, %c0_10] : memref<5x256x128xbf16, #tpu.memory_space<vmem>>, vector<1x256x128xbf16>
    %10 = vector.shape_cast %9 : vector<1x256x128xbf16> to vector<256x128xbf16>
    %cst_11 = arith.constant dense<0.000000e+00> : vector<8x128xf32>
    %11 = tpu.matmul %8, %10, %cst_11 {dimension_numbers = #tpu.dot_dimension_numbers<[1], [0], [0], [1], [0, 0, 1, 1], [], []>} : vector<8x256xbf16>, vector<256x128xbf16>, vector<8x128xf32> -> vector<8x128xf32>
    %12 = arith.addf %6, %11 : vector<8x128xf32>
    %c0_12 = arith.constant 0 : index
    %c1_13 = arith.constant 1 : index
    %c0_14 = arith.constant 0 : index
    %13 = vector.load %arg1[%c0_12, %c1_13, %c0_14] : memref<2x16x256xbf16, #tpu.memory_space<vmem>>, vector<1x8x256xbf16>
    %14 = vector.shape_cast %13 : vector<1x8x256xbf16> to vector<8x256xbf16>
    %c2 = arith.constant 2 : index
    %c0_15 = arith.constant 0 : index
    %c0_16 = arith.constant 0 : index
    %15 = vector.load %arg2[%c2, %c0_15, %c0_16] : memref<5x256x128xbf16, #tpu.memory_space<vmem>>, vector<1x256x128xbf16>
    %16 = vector.shape_cast %15 : vector<1x256x128xbf16> to vector<256x128xbf16>
    %cst_17 = arith.constant dense<0.000000e+00> : vector<8x128xf32>
    %17 = tpu.matmul %14, %16, %cst_17 {dimension_numbers = #tpu.dot_dimension_numbers<[1], [0], [0], [1], [0, 0, 1, 1], [], []>} : vector<8x256xbf16>, vector<256x128xbf16>, vector<8x128xf32> -> vector<8x128xf32>
    %18 = arith.addf %12, %17 : vector<8x128xf32>
    %c1_18 = arith.constant 1 : index
    %c1_19 = arith.constant 1 : index
    %c0_20 = arith.constant 0 : index
    %19 = vector.load %arg1[%c1_18, %c1_19, %c0_20] : memref<2x16x256xbf16, #tpu.memory_space<vmem>>, vector<1x8x256xbf16>
    %20 = vector.shape_cast %19 : vector<1x8x256xbf16> to vector<8x256xbf16>
    %c3 = arith.constant 3 : index
    %c0_21 = arith.constant 0 : index
    %c0_22 = arith.constant 0 : index
    %21 = vector.load %arg2[%c3, %c0_21, %c0_22] : memref<5x256x128xbf16, #tpu.memory_space<vmem>>, vector<1x256x128xbf16>
    %22 = vector.shape_cast %21 : vector<1x256x128xbf16> to vector<256x128xbf16>
    %cst_23 = arith.constant dense<0.000000e+00> : vector<8x128xf32>
    %23 = tpu.matmul %20, %22, %cst_23 {dimension_numbers = #tpu.dot_dimension_numbers<[1], [0], [0], [1], [0, 0, 1, 1], [], []>} : vector<8x256xbf16>, vector<256x128xbf16>, vector<8x128xf32> -> vector<8x128xf32>
    %24 = arith.addf %18, %23 : vector<8x128xf32>
    %c0_24 = arith.constant 0 : index
    %c2_25 = arith.constant 2 : index
    %c0_26 = arith.constant 0 : index
    %25 = vector.load %arg1[%c0_24, %c2_25, %c0_26] : memref<2x16x256xbf16, #tpu.memory_space<vmem>>, vector<1x8x256xbf16>
    %26 = vector.shape_cast %25 : vector<1x8x256xbf16> to vector<8x256xbf16>
    %c4 = arith.constant 4 : index
    %c0_27 = arith.constant 0 : index
    %c0_28 = arith.constant 0 : index
    %27 = vector.load %arg2[%c4, %c0_27, %c0_28] : memref<5x256x128xbf16, #tpu.memory_space<vmem>>, vector<1x256x128xbf16>
    %28 = vector.shape_cast %27 : vector<1x256x128xbf16> to vector<256x128xbf16>
    %cst_29 = arith.constant dense<0.000000e+00> : vector<8x128xf32>
    %29 = tpu.matmul %26, %28, %cst_29 {dimension_numbers = #tpu.dot_dimension_numbers<[1], [0], [0], [1], [0, 0, 1, 1], [], []>} : vector<8x256xbf16>, vector<256x128xbf16>, vector<8x128xf32> -> vector<8x128xf32>
    %30 = arith.addf %24, %29 : vector<8x128xf32>
    %c0_30 = arith.constant 0 : index
    %c0_31 = arith.constant 0 : index
    %31 = vector.load %arg3[%c0_30, %c0_31] : memref<1x128xf32, #tpu.memory_space<vmem>>, vector<1x128xf32>
    %32 = vector.broadcast %31 : vector<1x128xf32> to vector<8x128xf32>
    %33 = arith.addf %30, %32 : vector<8x128xf32>
    %c0_32 = arith.constant 0 : index
    %c0_33 = arith.constant 0 : index
    %34 = vector.load %arg4[%c0_32, %c0_33] : memref<8x128xf32, #tpu.memory_space<vmem>>, vector<8x128xf32>
    tpu.vector_store %arg4[%c0_32, %c0_33], %33 {strides = array<i32>} : memref<8x128xf32, #tpu.memory_space<vmem>>, vector<8x128xf32>,
    return
  }
  func.func @transform_0(%arg0: i32) -> (i32, i32, i32) {
    %c0_i32 = arith.constant 0 : i32
    %c0_i32_0 = arith.constant 0 : i32
    %c0_i32_1 = arith.constant 0 : i32
    %c0_i32_2 = arith.constant 0 : i32
    return %c0_i32, %c0_i32_0, %c0_i32_1 : i32, i32, i32
  }
  func.func @transform_1(%arg0: i32) -> (i32, i32, i32) {
    %c0_i32 = arith.constant 0 : i32
    %c0_i32_0 = arith.constant 0 : i32
    %c0_i32_1 = arith.constant 0 : i32
    %c0_i32_2 = arith.constant 0 : i32
    return %c0_i32, %c0_i32_0, %c0_i32_1 : i32, i32, i32
  }
  func.func @transform_2(%arg0: i32) -> (i32, i32) {
    %c0_i32 = arith.constant 0 : i32
    %c0_i32_0 = arith.constant 0 : i32
    %c0_i32_1 = arith.constant 0 : i32
    return %c0_i32, %c0_i32_0 : i32, i32
  }
  func.func @transform_3(%arg0: i32) -> (i32, i32) {
    %c0_i32 = arith.constant 0 : i32
    %c0_i32_0 = arith.constant 0 : i32
    %c0_i32_1 = arith.constant 0 : i32
    return %c0_i32, %c0_i32_0 : i32, i32
  }
}

</mosaic_0001>

<bundles_post_ra>
// kernel: pool_forward.1
= control target key start
LH: loop header
LB: loop body
LE: loop exit
PB: predicated region body
PF: predicated region fallthrough
CT: control target
= control target key end

     0   :  { %s1679_s1 = inlined_call_operand.vmem [shape: bf16[5,256,128], index: 1, kind: input, shape index: {}]   ;;  %s1680_s0 = inlined_call_operand.vmem [shape: bf16[2,16,256], index: 0, kind: input, shape index: {}]   ;;  %s1681_s2 = inlined_call_operand.vmem [shape: f32[1,128], index: 2, kind: input, shape index: {}]   ;;  %s1682_s3 = inlined_call_operand.vmem [shape: f32[8,128], index: 3, kind: output, shape index: {}]  }
   0x1   :  { %v1286_v0 = vld [vmem:[%s1679_s1 + $0xc0] sm:$0xff]   ;;  %v1290_v4 = vld [vmem:[%s1679_s1 + $0xc8] sm:$0xff]   ;;  %v1294_v8 = vld [vmem:[%s1679_s1 + $0xd0] sm:$0xff]  }
   0x2   :  { %v1287_v1 = vld [vmem:[%s1679_s1 + $0x40] sm:$0xff]   ;;  %1176 = vmatprep.subr.bf16.mxu0 %v1286_v0  ;;  %v1291_v5 = vld [vmem:[%s1679_s1 + $0x48] sm:$0xff]   ;;  %v1295_v9 = vld [vmem:[%s1679_s1 + $0x50] sm:$0xff]  }
   0x3   :  { %v1288_v2 = vld [vmem:[%s1679_s1 + $0x80] sm:$0xff]   ;;  %1198 = vmatprep.subr.bf16.mxu1 %v1287_v1  ;;  %v1292_v6 = vld [vmem:[%s1679_s1 + $0x88] sm:$0xff]   ;;  %v1296_v10 = vld [vmem:[%s1679_s1 + $0x90] sm:$0xff]  }
   0x4   :  { %v1289_v3 = vld [vmem:[%s1679_s1] sm:$0xff]   ;;  %1177 = vmatpush3.bf16.msra.mxu0 %v1288_v2  ;;  %v1293_v7 = vld [vmem:[%s1679_s1 + $0x8] sm:$0xff]   ;;  %v1297_v11 = vld [vmem:[%s1679_s1 + $0x10] sm:$0xff]  }
   0x5   :  { %1199 = vmatpush3.bf16.msra.mxu1 %v1289_v3  ;;  %1178 = vmatprep.subr.bf16.mxu0 %v1290_v4  ;;  %v1298_v12 = vld [vmem:[%s1679_s1 + $0xd8] sm:$0xff]   ;;  %v1302_v16 = vld [vmem:[%s1679_s1 + $0xe0] sm:$0xff]   ;;  %v1306_v20 = vld [vmem:[%s1679_s1 + $0xe8] sm:$0xff]  }
   0x6   :  { %1200 = vmatprep.subr.bf16.mxu1 %v1291_v5  ;;  %v1299_v13 = vld [vmem:[%s1679_s1 + $0x58] sm:$0xff]   ;;  %v1303_v17 = vld [vmem:[%s1679_s1 + $0x60] sm:$0xff]   ;;  %v1307_v21 = vld [vmem:[%s1679_s1 + $0x68] sm:$0xff]  }
   0x7   :  { %v1300_v14 = vld [vmem:[%s1679_s1 + $0x98] sm:$0xff]   ;;  %v1304_v18 = vld [vmem:[%s1679_s1 + $0xa0] sm:$0xff]   ;;  %v1308_v22 = vld [vmem:[%s1679_s1 + $0xa8] sm:$0xff]  }
   0x8   :  { %1179 = vmatpush3.bf16.msra.mxu0 %v1292_v6  ;;  %v1301_v15 = vld [vmem:[%s1679_s1 + $0x18] sm:$0xff]   ;;  %v1305_v19 = vld [vmem:[%s1679_s1 + $0x20] sm:$0xff]   ;;  %v1309_v23 = vld [vmem:[%s1679_s1 + $0x28] sm:$0xff]  }
   0x9   :  { %1201 = vmatpush3.bf16.msra.mxu1 %v1293_v7  ;;  %1180 = vmatprep.subr.bf16.mxu0 %v1294_v8  ;;  %v1310_v24 = vld [vmem:[%s1679_s1 + $0xf0] sm:$0xff]   ;;  %v1314_v28 = vld [vmem:[%s1679_s1 + $0xf8] sm:$0xff]   ;;  %v1500_v33 = vld [vmem:[%s1680_s0] sm:$0xff] }
   0xa   :  { %1202 = vmatprep.subr.bf16.mxu1 %v1295_v9  ;;  %v1311_v25 = vld [vmem:[%s1679_s1 + $0x70] sm:$0xff]   ;;  %v1315_v29 = vld [vmem:[%s1679_s1 + $0x78] sm:$0xff]   ;;  %v1005_v36 = vcombine.low %v1500_v33, %v1500_v33  ;;  %v1006_v37 = vcombine.high %v1500_v33, %v1500_v33  ;;  %v1322_v38 = vld [vmem:[%s1679_s1 + $0x140] sm:$0xff]  }
   0xb   :  { %v1312_v26 = vld [vmem:[%s1679_s1 + $0xb0] sm:$0xff]   ;;  %v1316_v30 = vld [vmem:[%s1679_s1 + $0xb8] sm:$0xff]   ;;  %v1323_v39 = vld [vmem:[%s1679_s1 + $0x100] sm:$0xff]  }
   0xc   :  { %1181 = vmatpush3.bf16.msra.mxu0 %v1296_v10  ;;  %v1313_v27 = vld [vmem:[%s1679_s1 + $0x30] sm:$0xff]   ;;  %v1317_v31 = vld [vmem:[%s1679_s1 + $0x38] sm:$0xff]   ;;  %361 = vmatprep.mubr.bf16.mxu1 %v1006_v37  ;;  %v1324_v40 = vld [vmem:[%s1679_s1 + $0x1c0] sm:$0xff]  }
   0xd   :  { %1203 = vmatpush3.bf16.msra.mxu1 %v1297_v11  ;;  %1182 = vmatprep.subr.bf16.mxu0 %v1298_v12  ;;  %v1495_v32 = vld [vmem:[%s1680_s0 + $0x10] sm:$0xff]  ;;  %v1325_v41 = vld [vmem:[%s1679_s1 + $0x180] sm:$0xff]   ;;  %v1326_v42 = vld [vmem:[%s1679_s1 + $0x148] sm:$0xff]  }
   0xe   :  { %1204 = vmatprep.subr.bf16.mxu1 %v1299_v13  ;;  %v987_v34 = vcombine.low %v1495_v32, %v1495_v32  ;;  %v988_v35 = vcombine.high %v1495_v32, %v1495_v32  ;;  %v1327_v43 = vld [vmem:[%s1679_s1 + $0x108] sm:$0xff]   ;;  %v1330_v46 = vld [vmem:[%s1679_s1 + $0x150] sm:$0xff]   ;;  %v1334_v50 = vld [vmem:[%s1679_s1 + $0x158] sm:$0xff]  }
   0xf   :  { %v1328_v44 = vld [vmem:[%s1679_s1 + $0x1c8] sm:$0xff]   ;;  %v1331_v47 = vld [vmem:[%s1679_s1 + $0x110] sm:$0xff]   ;;  %v1335_v51 = vld [vmem:[%s1679_s1 + $0x118] sm:$0xff]  }
  0x10   :  { %1183 = vmatpush3.bf16.msra.mxu0 %v1300_v14  ;;  %218 = vmatprep.mubr.bf16.mxu0 %v988_v35  ;;  %v1329_v45 = vld [vmem:[%s1679_s1 + $0x188] sm:$0xff]   ;;  %v1332_v48 = vld [vmem:[%s1679_s1 + $0x1d0] sm:$0xff]   ;;  %v1336_v52 = vld [vmem:[%s1679_s1 + $0x1d8] sm:$0xff]  }
  0x11   :  { %1205 = vmatpush3.bf16.msra.mxu1 %v1301_v15  ;;  %1184 = vmatprep.subr.bf16.mxu0 %v1302_v16  ;;  %v1333_v49 = vld [vmem:[%s1679_s1 + $0x190] sm:$0xff]   ;;  %v1337_v53 = vld [vmem:[%s1679_s1 + $0x198] sm:$0xff]   ;;  %v1338_v54 = vld [vmem:[%s1679_s1 + $0x160] sm:$0xff]  }
  0x12   :  { %1206 = vmatprep.subr.bf16.mxu1 %v1303_v17  ;;  %v1339_v55 = vld [vmem:[%s1679_s1 + $0x120] sm:$0xff]   ;;  %v1342_v58 = vld [vmem:[%s1679_s1 + $0x168] sm:$0xff]   ;;  %v1346_v62 = vld [vmem:[%s1679_s1 + $0x170] sm:$0xff]  }
  0x13   :  { %v1340_v56 = vld [vmem:[%s1679_s1 + $0x1e0] sm:$0xff]   ;;  %v1343_v59 = vld [vmem:[%s1679_s1 + $0x128] sm:$0xff]   ;;  %v1347_v63 = vld [vmem:[%s1679_s1 + $0x130] sm:$0xff]  }
  0x14   :  { %1185 = vmatpush3.bf16.msra.mxu0 %v1304_v18  ;;  %v1341_v57 = vld [vmem:[%s1679_s1 + $0x1a0] sm:$0xff]   ;;  %v1344_v60 = vld [vmem:[%s1679_s1 + $0x1e8] sm:$0xff]   ;;  %v1348_v0 = vld [vmem:[%s1679_s1 + $0x1f0] sm:$0xff]  }
  0x15   :  { %1207 = vmatpush3.bf16.msra.mxu1 %v1305_v19  ;;  %1186 = vmatprep.subr.bf16.mxu0 %v1306_v20  ;;  %v1345_v61 = vld [vmem:[%s1679_s1 + $0x1a8] sm:$0xff]   ;;  %v1349_v1 = vld [vmem:[%s1679_s1 + $0x1b0] sm:$0xff]   ;;  %v1350_v2 = vld [vmem:[%s1679_s1 + $0x178] sm:$0xff]  }
  0x16   :  { %1208 = vmatprep.subr.bf16.mxu1 %v1307_v21  ;;  %v1351_v3 = vld [vmem:[%s1679_s1 + $0x138] sm:$0xff]   ;;  %v1606_v5 = vld [vmem:[%s1680_s0 + $0x8] sm:$0x11]  ;;  %v1356_v9 = vld [vmem:[%s1679_s1 + $0x240] sm:$0xff]  }
  0x17   :  { %v1352_v4 = vld [vmem:[%s1679_s1 + $0x1f8] sm:$0xff]   ;;  %v1055_v6 = vcombine.low %v1500_v33, %v1606_v5  ;;  %v1056_v7 = vcombine.high %v1500_v33, %v1606_v5  ;;  %v1359_v21 = vld [vmem:[%s1679_s1 + $0x200] sm:$0xff]   ;;  %v1363_v33 = vld [vmem:[%s1679_s1 + $0x210] sm:$0xff]  }
  0x18   :  { %1187 = vmatpush3.bf16.msra.mxu0 %v1308_v22  ;;  %v1355_v8 = vld [vmem:[%s1679_s1 + $0x1b8] sm:$0xff]   ;;  %v1366_v37 = vld [vmem:[%s1679_s1 + $0x260] sm:$0xff]  }
  0x19   :  { %1209 = vmatpush3.bf16.msra.mxu1 %v1309_v23  ;;  %1188 = vmatprep.subr.bf16.mxu0 %v1310_v24  ;;  %v420_v10 = vshrl.u32 %v1056_v7, 16  ;;  %v422_v11 = vshll.u32 %v1056_v7, 16  ;;  %v413_v12 = vshrl.u32 %v1055_v6, 16  ;;  %v415_v13 = vshll.u32 %v1055_v6, 16  ;;  %v1074_v14 = vld [vmem:[%s1680_s0 + $0x18] sm:$0x11] }
  0x1a   :  { %1210 = vmatprep.subr.bf16.mxu1 %v1311_v25  ;;  %v1107_v15 = vcombine.low %v1495_v32, %v1074_v14  ;;  %v1108_v16 = vcombine.high %v1495_v32, %v1074_v14  ;;  %v1362_v32 = vld [vmem:[%s1679_s1 + $0x250] sm:$0xff]   ;;  %v1365_v35 = vld [vmem:[%s1679_s1 + $0x218] sm:$0xff]  }
  0x1b   :  { %v424_v17 = vrot.slane %v422_v11, 1  ;;  %v417_v18 = vrot.slane %v415_v13, 1 }
  0x1c   :  { %1189 = vmatpush3.bf16.msra.mxu0 %v1312_v26  ;;  %v616_v19 = vshrl.u32 %v1108_v16, 16  ;;  %v618_v20 = vshll.u32 %v1108_v16, 16  ;;  %v609_v22 = vshrl.u32 %v1107_v15, 16  ;;  %v611_v23 = vshll.u32 %v1107_v15, 16 }
  0x1d   :  { %1211 = vmatpush3.bf16.msra.mxu1 %v1313_v27  ;;  %1190 = vmatprep.subr.bf16.mxu0 %v1314_v28  ;;  %v425_v24 = vor.u32 %v424_v17, %v420_v10  ;;  %v418_v25 = vor.u32 %v417_v18, %v413_v12  ;;  %v1360_v28 = vld [vmem:[%s1679_s1 + $0x248] sm:$0xff]   ;;  %v1175_v12 = vld [vmem:[%s1681_s2] ss:$0 sm:$0xff] }
  0x1e   :  { %1212 = vmatprep.subr.bf16.mxu1 %v1315_v29  ;;  %v620_v26 = vrot.slane %v618_v20, 1  ;;  %v613_v27 = vrot.slane %v611_v23, 1 }
  0x20   :  { %1191 = vmatpush3.bf16.msra.mxu0 %v1316_v30  ;;  %v621_v29 = vor.u32 %v620_v26, %v616_v19  ;;  %v614_v30 = vor.u32 %v613_v27, %v609_v22 }
  0x21   :  { %1213 = vmatpush3.bf16.msra.mxu1 %v1317_v31  ;;  %1220 = vmatprep.subr.bf16.mxu0 %v1322_v38  ;;  %v1361_v31 = vld [vmem:[%s1679_s1 + $0x208] sm:$0xff]  }
  0x22   :  { %1242 = vmatprep.subr.bf16.mxu1 %v1324_v40  ;;  %v1367_v40 = vld [vmem:[%s1679_s1 + $0x220] sm:$0xff]  }
  0x23   :  { %219 = vmatmul.mubr.bf16.vlgmr.msra.gmra.mrb[0].mxu0 %v987_v34  ;;  %v1364_v34 = vld [vmem:[%s1679_s1 + $0x258] sm:$0xff]  }
  0x24   :  { %362 = vmatmul.mubr.bf16.vlgmr.msra.gmra.mrb[0].mxu1 %v1005_v36  ;;  %1221 = vmatpush3.bf16.msra.mxu0 %v1323_v39  ;;  %v761_v36 = vld [vmem:[%s1680_s0] sm:$0xee] }
  0x25   :  { %1243 = vmatpush3.bf16.msra.mxu1 %v1325_v41  ;;  %1222 = vmatprep.subr.bf16.mxu0 %v1326_v42  ;;  %v1158_v38 = vcombine.high %v761_v36, %v1606_v5  ;;  %v1368_v41 = vld [vmem:[%s1679_s1 + $0x268] sm:$0xff]  }
  0x26   :  { %1244 = vmatprep.subr.bf16.mxu1 %v1328_v44  ;;  %556 = vmatprep.mubr.bf16.mxu0 %v425_v24  ;;  %v1369_v42 = vld [vmem:[%s1679_s1 + $0x228] sm:$0xff]   ;;  %v1371_v44 = vld [vmem:[%s1679_s1 + $0x230] sm:$0xff]  }
  0x27   :  { %752 = vmatprep.mubr.bf16.mxu1 %v621_v29  ;;  %v801_v39 = vrot.slane %v1158_v38, 1 }
  0x28   :  { %1223 = vmatpush3.bf16.msra.mxu0 %v1327_v43  ;;  %v1370_v43 = vld [vmem:[%s1679_s1 + $0x270] sm:$0xff]  }
  0x29   :  { %1245 = vmatpush3.bf16.msra.mxu1 %v1329_v45  ;;  %1224 = vmatprep.subr.bf16.mxu0 %v1330_v46  ;;  %v1372_v45 = vld [vmem:[%s1679_s1 + $0x278] sm:$0xff]   ;;  %v1157_v46 = vcombine.low %v761_v36, %v1606_v5 }
  0x2a   :  { %1246 = vmatprep.subr.bf16.mxu1 %v1332_v48 }
  0x2b   :  { %v800_v48 = vrot.slane %v1157_v46, 1 }
  0x2c   :  { %1225 = vmatpush3.bf16.msra.mxu0 %v1331_v47  ;;  %v1373_v47 = vld [vmem:[%s1679_s1 + $0x238] sm:$0xff]  }
  0x2d   :  { %1247 = vmatpush3.bf16.msra.mxu1 %v1333_v49  ;;  %1226 = vmatprep.subr.bf16.mxu0 %v1334_v50 }
  0x2e   :  { %1248 = vmatprep.subr.bf16.mxu1 %v1336_v52 }
  0x30   :  { %1227 = vmatpush3.bf16.msra.mxu0 %v1335_v51 }
  0x31   :  { %1249 = vmatpush3.bf16.msra.mxu1 %v1337_v53  ;;  %1228 = vmatprep.subr.bf16.mxu0 %v1338_v54 }
  0x32   :  { %1250 = vmatprep.subr.bf16.mxu1 %v1340_v56 }
  0x34   :  { %1229 = vmatpush3.bf16.msra.mxu0 %v1339_v55 }
  0x35   :  { %1251 = vmatpush3.bf16.msra.mxu1 %v1341_v57  ;;  %1230 = vmatprep.subr.bf16.mxu0 %v1342_v58 }
  0x36   :  { %1252 = vmatprep.subr.bf16.mxu1 %v1344_v60 }
  0x38   :  { %1231 = vmatpush3.bf16.msra.mxu0 %v1343_v59 }
  0x39   :  { %1253 = vmatpush3.bf16.msra.mxu1 %v1345_v61  ;;  %1232 = vmatprep.subr.bf16.mxu0 %v1346_v62 }
  0x3a   :  { %1254 = vmatprep.subr.bf16.mxu1 %v1348_v0 }
  0x3c   :  { %1233 = vmatpush3.bf16.msra.mxu0 %v1347_v63 }
  0x3d   :  { %1255 = vmatpush3.bf16.msra.mxu1 %v1349_v1  ;;  %1234 = vmatprep.subr.bf16.mxu0 %v1350_v2 }
  0x3e   :  { %1256 = vmatprep.subr.bf16.mxu1 %v1352_v4 }
  0x40   :  { %1235 = vmatpush3.bf16.msra.mxu0 %v1351_v3 }
  0x41   :  { %1257 = vmatpush3.bf16.msra.mxu1 %v1355_v8  ;;  %1264 = vmatprep.subr.bf16.mxu0 %v1356_v9 }
  0x43   :  { %557 = vmatmul.mubr.bf16.vlgmr.msra.gmra.mrb[4].mxu0 %v418_v25 }
  0x44   :  { %1265 = vmatpush3.bf16.msra.mxu0 %v1359_v21  ;;  %753 = vmatmul.mubr.bf16.vlgmr.msra.gmra.mrb[4].mxu1 %v614_v30 }
  0x45   :  { %1266 = vmatprep.subr.bf16.mxu0 %v1360_v28  ;;  %932 = vmatprep.mubr.bf16.mxu0 %v801_v39 }
  0x48   :  { %1267 = vmatpush3.bf16.msra.mxu0 %v1361_v31 }
  0x49   :  { %1268 = vmatprep.subr.bf16.mxu0 %v1362_v32 }
  0x4c   :  { %1269 = vmatpush3.bf16.msra.mxu0 %v1363_v33 }
  0x4d   :  { %1270 = vmatprep.subr.bf16.mxu0 %v1364_v34 }
  0x50   :  { %1271 = vmatpush3.bf16.msra.mxu0 %v1365_v35 }
  0x51   :  { %1272 = vmatprep.subr.bf16.mxu0 %v1366_v37 }
  0x54   :  { %1273 = vmatpush3.bf16.msra.mxu0 %v1367_v40 }
  0x55   :  { %1274 = vmatprep.subr.bf16.mxu0 %v1368_v41 }
  0x58   :  { %1275 = vmatpush3.bf16.msra.mxu0 %v1369_v42 }
  0x59   :  { %1276 = vmatprep.subr.bf16.mxu0 %v1370_v43 }
  0x5c   :  { %1277 = vmatpush3.bf16.msra.mxu0 %v1371_v44 }
  0x5d   :  { %1278 = vmatprep.subr.bf16.mxu0 %v1372_v45 }
  0x60   :  { %1279 = vmatpush3.bf16.msra.mxu0 %v1373_v47 }
  0x63   :  { %933 = vmatmul.mubr.bf16.vlgmr.msra.gmra.mrb[8].mxu0 %v800_v48 }
  0xf6   :  { %v1192_v49 = vpop.f32.mrb[0].mxu0 }
  0xf7   :  { %v1214_v50 = vpop.f32.mrb[0].mxu1  ;;  %v1193_v51 = vpop.f32.mrb[1].mxu0 }
  0xf8   :  { %v1215_v52 = vpop.f32.mrb[1].mxu1  ;;  %v1194_v53 = vadd.f32 %v1193_v51, %v1192_v49  ;;  %v1195_v55 = vpop.f32.mrb[2].mxu0 }
  0xf9   :  { %v1216_v54 = vadd.f32 %v1215_v52, %v1214_v50  ;;  %v1217_v56 = vpop.f32.mrb[2].mxu1  ;;  %v1196_v57 = vpop.f32.mrb[3].mxu0 }
  0xfa   :  { %v1218_v58 = vpop.f32.mrb[3].mxu1 }
  0xfb   :  { %v364_v59 = vadd.f32 %v1216_v54, %v1194_v53 }
 0x116   :  { %v1236_v60 = vpop.f32.mrb[4].mxu0 }
 0x117   :  { %v1237_v61 = vpop.f32.mrb[5].mxu0  ;;  %v1258_v0 = vpop.f32.mrb[4].mxu1 }
 0x118   :  { %v1238_v62 = vadd.f32 %v1237_v61, %v1236_v60  ;;  %v1239_v63 = vpop.f32.mrb[6].mxu0  ;;  %v1259_v3 = vpop.f32.mrb[5].mxu1 }
 0x119   :  { %v1240_v1 = vpop.f32.mrb[7].mxu0  ;;  %v1260_v4 = vadd.f32 %v1259_v3, %v1258_v0  ;;  %v1261_v5 = vpop.f32.mrb[6].mxu1 }
 0x11a   :  { %v564_v2 = vadd.f32 %v1238_v62, %v364_v59  ;;  %v1262_v6 = vpop.f32.mrb[7].mxu1 }
 0x11c   :  { %v760_v7 = vadd.f32 %v1260_v4, %v564_v2 }
 0x136   :  { %v1280_v8 = vpop.f32.mrb[8].mxu0 }
 0x137   :  { %v1281_v9 = vpop.f32.mrb[9].mxu0 }
 0x138   :  { %v1282_v10 = vadd.f32 %v1281_v9, %v1280_v8  ;;  %v1283_v11 = vpop.f32.mrb[10].mxu0 }
 0x139   :  { %v1284_v13 = vpop.f32.mrb[11].mxu0 }
 0x13a   :  { %v940_v14 = vadd.f32 %v1282_v10, %v760_v7 }
 0x13c   :  { %v948_v15 = vadd.f32 %v1175_v12, %v940_v14 }
 0x13e   :  { %949 = vst [vmem:[%s1682_s3] sm:$0xff] %v948_v15 }

</bundles_post_ra>
